<compile_context>
chip_gen: v7x
topology: tpu7x:2x2x1
jax: 0.10.0
libtpu: 0.0.40
codegen_flags: <defaults>
</compile_context>

<pallas_src>
import functools

import jax
import jax.numpy as jnp
from jax.experimental import pallas as pl
from jax.experimental.pallas import tpu as pltpu


# ----------------------------------------------------------------------------
# Kernel 1: 3x3 / s1 / p1 conv for one image + per-channel partial batch stats.
#   x_ref    : (1, Cin, L)    bf16  channel-major, halo-padded, row-flattened
#                                   image (L = lane-padded Hp*Wp + 2)
#   w_ref    : (Cout, 9*Cin)  bf16  weights, K index = (3*kh + kw)*Cin + cin
#   mask_ref : (1, S)         f32   1.0 on valid output columns, 0.0 on halo
#   o_ref    : (1, Cout, S)   bf16  conv result, "wide" row layout (S = H*Wp)
#   stat_ref : (1, Cout, 2)   f32   packed per-image [sum, sum-of-squares]
# ----------------------------------------------------------------------------
def conv_stats_kernel(x_ref, w_ref, mask_ref, o_ref, stat_ref, *,
                      H, W, Wp, Cin, Cout):
    S = H * Wp
    x = x_ref[0]            # (Cin, L)      bf16
    w = w_ref[...]          # (Cout, 9*Cin) bf16

    # 9 shifted-window matmuls accumulated in registers.  Output layout is
    # (Cout, S): Cout on sublanes, spatial on lanes -> dense accumulator and a
    # lane-dense store; kw/kh shifts are pure lane offsets of the same buffer.
    acc = None
    for kh in range(3):
        for kw in range(3):
            k = 3 * kh + kw
            off = kh * Wp + kw
            xs = x[:, off:off + S]                 # (Cin, S)  lane-shifted view
            wk = w[:, k * Cin:(k + 1) * Cin]       # (Cout, Cin)
            p = jnp.dot(wk, xs, preferred_element_type=jnp.float32)
            acc = p if acc is None else acc + p    # (Cout, S) f32, in registers

    # Per-channel partial batch statistics over the VALID columns only,
    # computed from the f32 accumulator before the bf16 downcast.
    acc_m = acc * mask_ref[...]                    # mask broadcasts (1,S)->(Cout,S)
    stat_ref[0, :, 0:1] = jnp.sum(acc_m, axis=1, keepdims=True)
    stat_ref[0, :, 1:2] = jnp.sum(acc_m * acc_m, axis=1, keepdims=True)

    # Lane-dense store of the conv result (bf16 intermediate).
    o_ref[0] = acc.astype(o_ref.dtype)


# ----------------------------------------------------------------------------
# Kernel 2: BN affine (scale/shift folded from batch stats) + ReLU on the
# whole (N, Cout, S) tensor in one block (tiny tensor -> one grid step).
# ----------------------------------------------------------------------------
def bn_relu_kernel(x_ref, scale_ref, shift_ref, o_ref):
    x = x_ref[...].astype(jnp.float32)             # (N, Cout, S)
    y = x * scale_ref[...] + shift_ref[...]        # (1, Cout, 1) broadcasts
    o_ref[...] = jnp.maximum(y, 0.0)


def convbnrelu_pallas(x_nchw, weight, gamma, beta, *, eps=1e-5):
    """x_nchw: (N, Cin, H, W) f32; weight: (Cout, Cin, 3, 3); gamma/beta: (Cout,)."""
    N, Cin, H, W = x_nchw.shape
    Cout, Cin_w, KH, KW = weight.shape
    assert (KH, KW) == (3, 3) and Cin_w == Cin, "kernel specialized for k=3,s=1,p=1,g=1"

    Hp, Wp = H + 2, W + 2
    S = H * Wp                                   # lane width of the "wide" conv slab
    # Tap slices reach up to (2*Wp + 2) + S = Hp*Wp + 2; round up to 128 lanes.
    L = ((Hp * Wp + 2 + 127) // 128) * 128
    M = N * H * W

    # --- single fused XLA pass: halo pad + flatten + lane pad + bf16 cast, ---
    # --- all in the native channel-major layout (no NCHW->NHWC transpose). ---
    xpad = jnp.pad(x_nchw, ((0, 0), (0, 0), (1, 1), (1, 1)))        # (N,Cin,Hp,Wp)
    x_flat = xpad.reshape(N, Cin, Hp * Wp)
    x_flat = jnp.pad(x_flat, ((0, 0), (0, 0), (0, L - Hp * Wp)))
    x_flat = x_flat.astype(jnp.bfloat16)                            # (N,Cin,L)

    # (Cout, Cin, 3, 3) -> (Cout, 3, 3, Cin) -> (Cout, 9*Cin); K = (3kh+kw)*Cin+cin.
    w_flat = jnp.transpose(weight, (0, 2, 3, 1)).reshape(Cout, KH * KW * Cin)
    w_flat = w_flat.astype(jnp.bfloat16)

    # Valid-column mask for the wide layout: column j is valid iff (j % Wp) < W.
    colmask = ((jnp.arange(S) % Wp) < W).astype(jnp.float32).reshape(1, S)

    kernel1 = functools.partial(conv_stats_kernel, H=H, W=W, Wp=Wp,
                                Cin=Cin, Cout=Cout)

    # --- Pass 1: conv + per-image partial batch statistics -------------------
    conv_t, stats = pl.pallas_call(
        kernel1,
        out_shape=(
            jax.ShapeDtypeStruct((N, Cout, S), jnp.bfloat16),
            jax.ShapeDtypeStruct((N, Cout, 2), jnp.float32),
        ),
        grid_spec=pltpu.PrefetchScalarGridSpec(
            num_scalar_prefetch=0,
            grid=(N,),
            in_specs=[
                pl.BlockSpec((1, Cin, L), lambda n: (n, 0, 0)),
                pl.BlockSpec((Cout, KH * KW * Cin), lambda n: (0, 0)),
                pl.BlockSpec((1, S), lambda n: (0, 0)),
            ],
            out_specs=[
                pl.BlockSpec((1, Cout, S), lambda n: (n, 0, 0)),
                pl.BlockSpec((1, Cout, 2), lambda n: (n, 0, 0)),
            ],
        ),
        compiler_params=pltpu.CompilerParams(
            dimension_semantics=("parallel",),   # no carried state -> megacore-friendly
            vmem_limit_bytes=32 * 1024 * 1024,
        ),
    )(x_flat, w_flat, colmask)

    # --- fold batch stats into per-channel scale / shift (tiny, plain JAX) ---
    ch_sum = jnp.sum(stats[:, :, 0], axis=0)                 # (Cout,)
    ch_sq = jnp.sum(stats[:, :, 1], axis=0)
    mean = ch_sum / float(M)
    var = jnp.maximum(ch_sq / float(M) - mean * mean, 0.0)   # biased var, clamped >= 0
    inv_std = jax.lax.rsqrt(var + eps)
    scale = (gamma * inv_std).reshape(1, Cout, 1).astype(jnp.float32)
    shift = (beta - mean * gamma * inv_std).reshape(1, Cout, 1).astype(jnp.float32)

    # --- Pass 2: BN affine + ReLU, whole tensor in one block -----------------
    y_wide = pl.pallas_call(
        bn_relu_kernel,
        out_shape=jax.ShapeDtypeStruct((N, Cout, S), jnp.float32),
    )(conv_t, scale, shift)

    # Drop the (right-halo) garbage columns: (N, Cout, H, Wp)[..., :W] -> NCHW.
    return y_wide.reshape(N, Cout, H, Wp)[:, :, :, :W]


# ----------------------------------------------------------------------------
# Pure-JAX reference.  conv_dtype selects the precision of the conv
# intermediate handed to the BN affine: bf16 matches the kernel's data path
# exactly (stats always computed from the f32 conv), f32 is the module's
# nominal full-precision semantics.
# ----------------------------------------------------------------------------
def convbnrelu_ref(x_nchw, weight, gamma, beta, eps=1e-5, conv_dtype=jnp.float32):
    conv = jax.lax.conv_general_dilated(
        x_nchw.astype(jnp.bfloat16), weight.astype(jnp.bfloat16),
        window_strides=(1, 1), padding=((1, 1), (1, 1)),
        dimension_numbers=("NCHW", "OIHW", "NCHW"),
        preferred_element_type=jnp.float32,
    )
    mean = jnp.mean(conv, axis=(0, 2, 3), keepdims=True)
    var = jnp.mean((conv - mean) ** 2, axis=(0, 2, 3), keepdims=True)
    vals = conv.astype(conv_dtype).astype(jnp.float32)
    y = (vals - mean) * jax.lax.rsqrt(var + eps)
    y = y * gamma[None, :, None, None] + beta[None, :, None, None]
    return jnp.maximum(y, 0.0)


if __name__ == "__main__":
    key = jax.random.PRNGKey(0)
    k_x, k_w, k_g, k_b = jax.random.split(key, 4)

    N, Cin, H, W = 2, 4, 16, 16
    Cout = 8

    x = jax.random.normal(k_x, (N, Cin, H, W), dtype=jnp.float32)
    weight = jax.random.normal(k_w, (Cout, Cin, 3, 3), dtype=jnp.float32) * 0.1
    gamma = 1.0 + 0.1 * jax.random.normal(k_g, (Cout,), dtype=jnp.float32)
    beta = 0.1 * jax.random.normal(k_b, (Cout,), dtype=jnp.float32)

    out = convbnrelu_pallas(x, weight, gamma, beta)
    out = jax.block_until_ready(out)
    assert out.shape == (N, Cout, H, W)

    # Tight check against a reference matched to the kernel's mixed-precision
    # data path (bf16 conv intermediate, f32 batch statistics).
    ref = convbnrelu_ref(x, weight, gamma, beta, conv_dtype=jnp.bfloat16)
    err = float(jnp.max(jnp.abs(out - ref)))
    assert err < 2e-3, f"mismatch vs bf16-path reference: {err}"

    # Sanity check against the module's pure-f32 semantics (looser tolerance
    # only because of the bf16 conv intermediate).
    ref32 = convbnrelu_ref(x, weight, gamma, beta, conv_dtype=jnp.float32)
    err32 = float(jnp.max(jnp.abs(out - ref32)))
    assert err32 < 5e-2, f"mismatch vs f32 reference: {err32}"

    print("KERNEL_OK")
</pallas_src>

<mosaic_0001>
module attributes {stable_mosaic.version = 11 : i64} {
  func.func @conv_stats_kernel(%arg0: i32, %arg1: memref<1x4x384xbf16, #tpu.memory_space<vmem>>, %arg2: memref<8x36xbf16, #tpu.memory_space<vmem>>, %arg3: memref<1x288xf32, #tpu.memory_space<vmem>>, %arg4: memref<1x8x288xbf16, #tpu.memory_space<vmem>>, %arg5: memref<1x8x2xf32, #tpu.memory_space<vmem>>) attributes {dimension_semantics = [#tpu.dimension_semantics<parallel>], iteration_bounds = array<i64: 2>, scalar_prefetch = 0 : i64, scratch_operands = 0 : i64, tpu.core_type = #tpu.core_type<tc>, window_params = [{transform_indices = @transform_0, window_bounds = array<i64: 1, 4, 384>}, {pipeline_mode = #tpu.pipeline_mode<synchronous>, transform_indices = @transform_1, window_bounds = array<i64: 8, 36>}, {pipeline_mode = #tpu.pipeline_mode<synchronous>, transform_indices = @transform_2, window_bounds = array<i64: 1, 288>}, {transform_indices = @transform_3, window_bounds = array<i64: 1, 8, 288>}, {transform_indices = @transform_4, window_bounds = array<i64: 1, 8, 2>}]} {
    %c0 = arith.constant 0 : index
    %c0_0 = arith.constant 0 : index
    %c0_1 = arith.constant 0 : index
    %0 = vector.load %arg1[%c0, %c0_0, %c0_1] : memref<1x4x384xbf16, #tpu.memory_space<vmem>>, vector<1x4x384xbf16>
    %1 = vector.shape_cast %0 : vector<1x4x384xbf16> to vector<4x384xbf16>
    %c0_2 = arith.constant 0 : index
    %c0_3 = arith.constant 0 : index
    %2 = vector.load %arg2[%c0_2, %c0_3] : memref<8x36xbf16, #tpu.memory_space<vmem>>, vector<8x36xbf16>
    %3 = vector.extract_strided_slice %1 {offsets = [0, 0], sizes = [4, 288], strides = [1, 1]} : vector<4x384xbf16> to vector<4x288xbf16>
    %4 = vector.extract_strided_slice %2 {offsets = [0, 0], sizes = [8, 4], strides = [1, 1]} : vector<8x36xbf16> to vector<8x4xbf16>
    %cst = arith.constant dense<0.000000e+00> : vector<8x288xf32>
    %5 = tpu.matmul %4, %3, %cst {dimension_numbers = #tpu.dot_dimension_numbers<[1], [0], [0], [1], [0, 0, 1, 1], [], []>} : vector<8x4xbf16>, vector<4x288xbf16>, vector<8x288xf32> -> vector<8x288xf32>
    %6 = vector.extract_strided_slice %1 {offsets = [0, 1], sizes = [4, 288], strides = [1, 1]} : vector<4x384xbf16> to vector<4x288xbf16>
    %7 = vector.extract_strided_slice %2 {offsets = [0, 4], sizes = [8, 4], strides = [1, 1]} : vector<8x36xbf16> to vector<8x4xbf16>
    %cst_4 = arith.constant dense<0.000000e+00> : vector<8x288xf32>
    %8 = tpu.matmul %7, %6, %cst_4 {dimension_numbers = #tpu.dot_dimension_numbers<[1], [0], [0], [1], [0, 0, 1, 1], [], []>} : vector<8x4xbf16>, vector<4x288xbf16>, vector<8x288xf32> -> vector<8x288xf32>
    %9 = arith.addf %5, %8 : vector<8x288xf32>
    %10 = vector.extract_strided_slice %1 {offsets = [0, 2], sizes = [4, 288], strides = [1, 1]} : vector<4x384xbf16> to vector<4x288xbf16>
    %11 = vector.extract_strided_slice %2 {offsets = [0, 8], sizes = [8, 4], strides = [1, 1]} : vector<8x36xbf16> to vector<8x4xbf16>
    %cst_5 = arith.constant dense<0.000000e+00> : vector<8x288xf32>
    %12 = tpu.matmul %11, %10, %cst_5 {dimension_numbers = #tpu.dot_dimension_numbers<[1], [0], [0], [1], [0, 0, 1, 1], [], []>} : vector<8x4xbf16>, vector<4x288xbf16>, vector<8x288xf32> -> vector<8x288xf32>
    %13 = arith.addf %9, %12 : vector<8x288xf32>
    %14 = vector.extract_strided_slice %1 {offsets = [0, 18], sizes = [4, 288], strides = [1, 1]} : vector<4x384xbf16> to vector<4x288xbf16>
    %15 = vector.extract_strided_slice %2 {offsets = [0, 12], sizes = [8, 4], strides = [1, 1]} : vector<8x36xbf16> to vector<8x4xbf16>
    %cst_6 = arith.constant dense<0.000000e+00> : vector<8x288xf32>
    %16 = tpu.matmul %15, %14, %cst_6 {dimension_numbers = #tpu.dot_dimension_numbers<[1], [0], [0], [1], [0, 0, 1, 1], [], []>} : vector<8x4xbf16>, vector<4x288xbf16>, vector<8x288xf32> -> vector<8x288xf32>
    %17 = arith.addf %13, %16 : vector<8x288xf32>
    %18 = vector.extract_strided_slice %1 {offsets = [0, 19], sizes = [4, 288], strides = [1, 1]} : vector<4x384xbf16> to vector<4x288xbf16>
    %19 = vector.extract_strided_slice %2 {offsets = [0, 16], sizes = [8, 4], strides = [1, 1]} : vector<8x36xbf16> to vector<8x4xbf16>
    %cst_7 = arith.constant dense<0.000000e+00> : vector<8x288xf32>
    %20 = tpu.matmul %19, %18, %cst_7 {dimension_numbers = #tpu.dot_dimension_numbers<[1], [0], [0], [1], [0, 0, 1, 1], [], []>} : vector<8x4xbf16>, vector<4x288xbf16>, vector<8x288xf32> -> vector<8x288xf32>
    %21 = arith.addf %17, %20 : vector<8x288xf32>
    %22 = vector.extract_strided_slice %1 {offsets = [0, 20], sizes = [4, 288], strides = [1, 1]} : vector<4x384xbf16> to vector<4x288xbf16>
    %23 = vector.extract_strided_slice %2 {offsets = [0, 20], sizes = [8, 4], strides = [1, 1]} : vector<8x36xbf16> to vector<8x4xbf16>
    %cst_8 = arith.constant dense<0.000000e+00> : vector<8x288xf32>
    %24 = tpu.matmul %23, %22, %cst_8 {dimension_numbers = #tpu.dot_dimension_numbers<[1], [0], [0], [1], [0, 0, 1, 1], [], []>} : vector<8x4xbf16>, vector<4x288xbf16>, vector<8x288xf32> -> vector<8x288xf32>
    %25 = arith.addf %21, %24 : vector<8x288xf32>
    %26 = vector.extract_strided_slice %1 {offsets = [0, 36], sizes = [4, 288], strides = [1, 1]} : vector<4x384xbf16> to vector<4x288xbf16>
    %27 = vector.extract_strided_slice %2 {offsets = [0, 24], sizes = [8, 4], strides = [1, 1]} : vector<8x36xbf16> to vector<8x4xbf16>
    %cst_9 = arith.constant dense<0.000000e+00> : vector<8x288xf32>
    %28 = tpu.matmul %27, %26, %cst_9 {dimension_numbers = #tpu.dot_dimension_numbers<[1], [0], [0], [1], [0, 0, 1, 1], [], []>} : vector<8x4xbf16>, vector<4x288xbf16>, vector<8x288xf32> -> vector<8x288xf32>
    %29 = arith.addf %25, %28 : vector<8x288xf32>
    %30 = vector.extract_strided_slice %1 {offsets = [0, 37], sizes = [4, 288], strides = [1, 1]} : vector<4x384xbf16> to vector<4x288xbf16>
    %31 = vector.extract_strided_slice %2 {offsets = [0, 28], sizes = [8, 4], strides = [1, 1]} : vector<8x36xbf16> to vector<8x4xbf16>
    %cst_10 = arith.constant dense<0.000000e+00> : vector<8x288xf32>
    %32 = tpu.matmul %31, %30, %cst_10 {dimension_numbers = #tpu.dot_dimension_numbers<[1], [0], [0], [1], [0, 0, 1, 1], [], []>} : vector<8x4xbf16>, vector<4x288xbf16>, vector<8x288xf32> -> vector<8x288xf32>
    %33 = arith.addf %29, %32 : vector<8x288xf32>
    %34 = vector.extract_strided_slice %1 {offsets = [0, 38], sizes = [4, 288], strides = [1, 1]} : vector<4x384xbf16> to vector<4x288xbf16>
    %35 = vector.extract_strided_slice %2 {offsets = [0, 32], sizes = [8, 4], strides = [1, 1]} : vector<8x36xbf16> to vector<8x4xbf16>
    %cst_11 = arith.constant dense<0.000000e+00> : vector<8x288xf32>
    %36 = tpu.matmul %35, %34, %cst_11 {dimension_numbers = #tpu.dot_dimension_numbers<[1], [0], [0], [1], [0, 0, 1, 1], [], []>} : vector<8x4xbf16>, vector<4x288xbf16>, vector<8x288xf32> -> vector<8x288xf32>
    %37 = arith.addf %33, %36 : vector<8x288xf32>
    %c0_12 = arith.constant 0 : index
    %c0_13 = arith.constant 0 : index
    %38 = vector.load %arg3[%c0_12, %c0_13] : memref<1x288xf32, #tpu.memory_space<vmem>>, vector<1x288xf32>
    %39 = vector.broadcast %38 : vector<1x288xf32> to vector<8x288xf32>
    %40 = arith.mulf %37, %39 : vector<8x288xf32>
    %cst_14 = arith.constant dense<0.000000e+00> : vector<8xf32>
    %41 = vector.multi_reduction <add>, %40, %cst_14 [1] : vector<8x288xf32> to vector<8xf32>
    %42 = vector.shape_cast %41 : vector<8xf32> to vector<8x1xf32>
    %c0_15 = arith.constant 0 : index
    %c0_16 = arith.constant 0 : index
    %c0_17 = arith.constant 0 : index
    %43 = vector.load %arg5[%c0_15, %c0_16, %c0_17] : memref<1x8x2xf32, #tpu.memory_space<vmem>>, vector<1x8x1xf32>
    %44 = vector.shape_cast %43 : vector<1x8x1xf32> to vector<8x1xf32>
    %45 = vector.shape_cast %42 : vector<8x1xf32> to vector<1x8x1xf32>
    tpu.vector_store %arg5[%c0_15, %c0_16, %c0_17], %45 {strides = array<i32>} : memref<1x8x2xf32, #tpu.memory_space<vmem>>, vector<1x8x1xf32>,
    %46 = arith.mulf %40, %40 : vector<8x288xf32>
    %cst_18 = arith.constant dense<0.000000e+00> : vector<8xf32>
    %47 = vector.multi_reduction <add>, %46, %cst_18 [1] : vector<8x288xf32> to vector<8xf32>
    %48 = vector.shape_cast %47 : vector<8xf32> to vector<8x1xf32>
    %c0_19 = arith.constant 0 : index
    %c0_20 = arith.constant 0 : index
    %c1 = arith.constant 1 : index
    %49 = vector.load %arg5[%c0_19, %c0_20, %c1] : memref<1x8x2xf32, #tpu.memory_space<vmem>>, vector<1x8x1xf32>
    %50 = vector.shape_cast %49 : vector<1x8x1xf32> to vector<8x1xf32>
    %51 = vector.shape_cast %48 : vector<8x1xf32> to vector<1x8x1xf32>
    tpu.vector_store %arg5[%c0_19, %c0_20, %c1], %51 {strides = array<i32>} : memref<1x8x2xf32, #tpu.memory_space<vmem>>, vector<1x8x1xf32>,
    %52 = arith.truncf %37 : vector<8x288xf32> to vector<8x288xbf16>
    %c0_21 = arith.constant 0 : index
    %c0_22 = arith.constant 0 : index
    %c0_23 = arith.constant 0 : index
    %53 = vector.load %arg4[%c0_21, %c0_22, %c0_23] : memref<1x8x288xbf16, #tpu.memory_space<vmem>>, vector<1x8x288xbf16>
    %54 = vector.shape_cast %53 : vector<1x8x288xbf16> to vector<8x288xbf16>
    %55 = vector.shape_cast %52 : vector<8x288xbf16> to vector<1x8x288xbf16>
    tpu.vector_store %arg4[%c0_21, %c0_22, %c0_23], %55 {strides = array<i32>} : memref<1x8x288xbf16, #tpu.memory_space<vmem>>, vector<1x8x288xbf16>,
    return
  }
  func.func @transform_0(%arg0: i32) -> (i32, i32, i32) {
    %c0_i32 = arith.constant 0 : i32
    %c0_i32_0 = arith.constant 0 : i32
    %c0_i32_1 = arith.constant 0 : i32
    return %arg0, %c0_i32, %c0_i32_0 : i32, i32, i32
  }
  func.func @transform_1(%arg0: i32) -> (i32, i32) {
    %c0_i32 = arith.constant 0 : i32
    %c0_i32_0 = arith.constant 0 : i32
    %c0_i32_1 = arith.constant 0 : i32
    return %c0_i32, %c0_i32_0 : i32, i32
  }
  func.func @transform_2(%arg0: i32) -> (i32, i32) {
    %c0_i32 = arith.constant 0 : i32
    %c0_i32_0 = arith.constant 0 : i32
    %c0_i32_1 = arith.constant 0 : i32
    return %c0_i32, %c0_i32_0 : i32, i32
  }
  func.func @transform_3(%arg0: i32) -> (i32, i32, i32) {
    %c0_i32 = arith.constant 0 : i32
    %c0_i32_0 = arith.constant 0 : i32
    %c0_i32_1 = arith.constant 0 : i32
    return %arg0, %c0_i32, %c0_i32_0 : i32, i32, i32
  }
  func.func @transform_4(%arg0: i32) -> (i32, i32, i32) {
    %c0_i32 = arith.constant 0 : i32
    %c0_i32_0 = arith.constant 0 : i32
    %c0_i32_1 = arith.constant 0 : i32
    return %arg0, %c0_i32, %c0_i32_0 : i32, i32, i32
  }
}

</mosaic_0001>

<bundles_post_ra>
// kernel: tpu_custom_call.1
= control target key start
LH: loop header
LB: loop body
LE: loop exit
PB: predicated region body
PF: predicated region fallthrough
CT: control target
= control target key end

     0   :  { %10 = vsyncpa [#allocation3], 0  ;;  %s2149_s0 = inlined_call_operand.hbm [shape: bf16[2,4,384], index: 0, kind: input, shape index: {}]   ;;  %s2150_s1 = inlined_call_operand.hbm [shape: bf16[8,36], index: 1, kind: input, shape index: {}]   ;;  %s2151_s2 = inlined_call_operand.vmem [shape: f32[1,288], index: 2, kind: input, shape index: {}]   ;;  %s2152_s3 = inlined_call_operand.hbm [shape: bf16[2,8,288], index: 3, kind: output, shape index: {0}]   ;;  %s2153_s4 = inlined_call_operand.vmem [shape: f32[2,8,2], index: 4, kind: output, shape index: {1}]  }
   0x1   :  { %12 = vsyncpa [#allocation3 + $0x1], 0 }
   0x2   :  { %13 = vsyncpa [#allocation6], 0 }
   0x3   :  { %14 = vsyncpa [#allocation4], 0 }
   0x4   :  { %16 = vsyncpa [#allocation4 + $0x1], 0  ;;  %s1828_s15 = smov 0   ;;  %s1830_s16 = smov 0  }
   0x5   :  { %s1832_s17 = smov 0   ;;  %s1834_s18 = smov 0  }
   0x6 LB: > { %s1849_s19 = sadd.s32 4294967295, %s1779_s18   ;;  %s1389_s20 = sadd.s32 4294967294, %s1779_s18   ;;  %s1779_s18 = sphi %s1834_s18, %s2177_s18   ;;  %s1775_s17 = sphi %s1832_s17, %s2176_s17   ;;  %s1771_s16 = sphi %s1830_s16, %s2175_s16   ;;  %s1767_s15 = sphi %s1828_s15, %s2174_s15  }
   0x7   : > { %p42_p0 = scmp.ne.s32.totalorder %s1771_s16, %s1767_s15  ;;  %p2154_p1 = scmp.eq.s32.totalorder %s1849_s19, 0 }
   0x8   : > { %p114_p3 = scmp.eq.s32.totalorder %s1389_s20, 1  ;;  %p1390_p5 = scmp.ge.s32.totalorder %s1779_s18, 1 }
   0x9   : > { %p1858_p4 = por %p2154_p1, %p42_p0  ;;  %p147_p7 = scmp.lt.s32.totalorder %s1779_s18, 3 }
   0xa   : > { %p1863_p6 = por %p114_p3, %p42_p0  ;;  %s1781_s24 = smov [#allocation5]  }
   0xb   : > { %s2157_s21 = scalar_select %p1858_p4, 1, 0 }
   0xc   : > { %s2158_s22 = scalar_select %p1863_p6, 1, 0 }
   0xd   : > { %p1868_p8 = pnand %p1390_p5, %p147_p7  ;;  %s160_s25 = sshll.u32 %s1781_s24, 4  ;;  %s161_s25 = int_to_ptr.vmem [resolvable:$true] %s160_s25 }
   0xe   : > { %s1876_s26 = sadd.s32 1, %s1779_s18   ;;  %s29_s30 = sadd.s32 1, %s1775_s17 }
   0xf   : > { %s2159_s23 = scalar_select %p1868_p8, 1, 0 }
  0x10   : > { %p1581_p10 = pneg %p1868_p8  ;;  %s26_s28 = ssub.s32 %s1779_s18, %s1876_s26 }
  0x11   : > { %p1886_p12 = scmp.eq.s32.totalorder %s26_s28, 0  ;;  %s1651_s7 = scalar_lea.hbm %s2150_s1, 64 }
  0x12   : > { %p1880_p11 = pnand %p1581_p10, %p2154_p1  ;;  %p1652_p0 = scmp.ne.s32.totalorder %s2150_s1, %s1651_s7 }
  0x13   : > { %s2161_s29 = scalar_select %p1886_p12, 1, 0 }
  0x14   : > { %p1653_p3 = pneg %p1880_p11  ;;  %p1658_p10 = scmp.lt.u32.totalorder %s1651_s7, %s2150_s1 }
  0x16   : > { %p1654_p5 = pnand %p1653_p3, %p1652_p0 }
  0x18   : > { %p1655_p7 = pneg %p1654_p5 }
  0x1a   : > { %p1660_p9 = pnand %p1658_p10, %p1655_p7 }
  0x1c   : > { %1663 = shalt.err (!%p1660_p9)
}
  0x1d   : > { %s1664_s12 = scalar_lea.vmem %s161_s25, 64  ;;  %p1672_p6 = scmp.lt.s32.totalorder %s161_s25, %s161_s25 }
  0x1e   : > { %p1665_p1 = scmp.ne.s32.totalorder %s161_s25, %s1664_s12  ;;  %p1673_p4 = scmp.lt.s32.totalorder %s1664_s12, %s1664_s12 }
  0x20   : > { %p1667_p2 = pnand %p1665_p1, %p1653_p3  ;;  %p1674_p8 = por %p1673_p4, %p1672_p6 }
  0x22   : > { %p1668_p13 = pneg %p1667_p2 }
  0x24   : > { %p1675_p12 = pnand %p1674_p8, %p1668_p13 }
  0x26   : > { %1678 = shalt.err (!%p1675_p12)
}
  0x27   : > { %1584 = dma.hbm_to_vmem [thread:$0]  (!%p1880_p11), %s2150_s1, 64, %s161_s25, [#allocation6]  }
  0x28   : > { %p2162_p1 = scmp.ne.s32.totalorder %s2161_s29, 0  ;;  %p37_p2 = scmp.eq.s32.totalorder %s1779_s18, 0 }
  0x29   : > { %p2163_p4 = scmp.ne.s32.totalorder %s1775_s17, %s1771_s16  ;;  %p2164_p6 = scmp.eq.s32.totalorder %s1849_s19, 1 }
  0x2a   : > { %s1912_s20 = scalar_select %p2162_p1, %s1775_s17, %s29_s30  }
  0x2b   : > { %p1920_p8 = por %p2164_p6, %p2163_p4  ;;  %p1594_p9 = scmp.lt.s32.totalorder %s1779_s18, 2 }
  0x2c   : > { %s174_s27 = sand.u32 1, %s1775_s17   ;;  %p2166_p12 = pmov %p2163_p4 }
  0x2d   : > { %s1568_s28 = smul.u32 6, %s174_s27  ;;  %s175_s9 = scalar_lea.sflag [#allocation3], %s174_s27 }
  0x2e   : > { %p38_p13 = por %p37_p2, %p2166_p12  ;;  %s1569_s5 = smul.u32 96, %s1779_s18 }
  0x2f   : > { %s178_s7 = scalar_lea.vmem [#allocation2], %s1568_s28  ;;  %s1684_s13 = scalar_lea.hbm %s2149_s0, 192 }
  0x30   : > { %p1930_p0 = pnand %p1594_p9, %p38_p13  ;;  %s1937_s30 = scalar_lea.hbm %s2149_s0, %s1569_s5 }
  0x31   : > { %s186_s8 = sshll.u32 %s178_s7, 4  ;;  %s1679_s10 = scalar_lea.hbm %s1937_s30, 96  ;;  %s1939_s8 = int_to_ptr.vmem [resolvable:$true] %s186_s8 }
  0x32   : > { %p1680_p11 = scmp.ne.s32.totalorder %s1937_s30, %s1679_s10  ;;  %p1681_p3 = pneg %p1930_p0 }
  0x33   : > { %p1685_p10 = scmp.lt.u32.totalorder %s1937_s30, %s2149_s0  ;;  %p1686_p1 = scmp.lt.u32.totalorder %s1684_s13, %s1679_s10 }
  0x34   : > { %p1682_p5 = pnand %p1681_p3, %p1680_p11  ;;  %p1688_p4 = scmp.lt.u32.totalorder %s1679_s10, %s1937_s30 }
  0x35   : > { %p1687_p2 = por %p1686_p1, %p1685_p10 }
  0x36   : > { %p1683_p7 = pneg %p1682_p5 }
  0x37   : > { %p1689_p6 = por %p1688_p4, %p1687_p2 }
  0x39   : > { %p1690_p9 = pnand %p1689_p6, %p1683_p7 }
  0x3b   : > { %1693 = shalt.err (!%p1690_p9)
}
  0x3c   : > { %s1694_s27 = scalar_lea.vmem %s1939_s8, 96  ;;  %s1782_s28 = smov [#allocation2]  }
  0x3d   : > { %p1695_p12 = scmp.ne.s32.totalorder %s1939_s8, %s1694_s27  ;;  %s1699_s25 = sshll.u32 %s1782_s28, 4  ;;  %s1700_s25 = int_to_ptr.vmem [resolvable:$false] %s1699_s25 }
  0x3e   : > { %s1701_s29 = scalar_lea.vmem %s1700_s25, 192  ;;  %p1702_p5 = scmp.lt.s32.totalorder %s1939_s8, %s1700_s25 }
  0x3f   : > { %p1697_p13 = pnand %p1695_p12, %p1681_p3  ;;  %p1703_p10 = scmp.lt.s32.totalorder %s1701_s29, %s1694_s27 }
  0x41   : > { %p1698_p11 = pneg %p1697_p13  ;;  %p1704_p1 = por %p1703_p10, %p1702_p5 }
  0x43   : > { %p1705_p2 = pnand %p1704_p1, %p1698_p11 }
  0x45   : > { %1708 = shalt.err (!%p1705_p2)
}
  0x46   : > { %1588 = dma.hbm_to_vmem [thread:$0]  (!%p1930_p0), %s1937_s30, 96, %s1939_s8, %s175_s9  }
  0x47   : > { %p2168_p7 = scmp.ne.s32.totalorder %s2159_s23, 0 }
  0x48   : > { %s1969_s7 = sand.u32 (!%p2168_p7), 1, %s1771_s16   ;;  %p2169_p3 = scmp.ne.s32.totalorder (!%p2168_p7), %s2157_s21, 0 }
  0x49   : > { %195 = sbr.rel (%p2168_p7) target bundleno = 677 (0x2a5), region = 32  ;;  %s198_s11 = scalar_lea.sflag (!%p2168_p7), [#allocation3], %s1969_s7 }
  0x4a   : > { %s1570_s10 = smul.u32 (!%p2168_p7), 6, %s1969_s7 }
  0x4c   : > { %s201_s12 = scalar_lea.vmem (!%p2168_p7), [#allocation2], %s1570_s10 }
  0x50   : > { %1754 = dma.done.wait (%p2169_p3), %s198_s11, 96  }
  0x51   : > { %1756 = vsyncadd (%p2169_p3), %s198_s11, 4294967200  ;;  %p2170_p4 = scmp.eq.s32.totalorder %s1849_s19, 0 }
  0x53   : > { %1758 = dma.done.wait (%p2170_p4), [#allocation6], 64   ;;  %p2171_p0 = pmov %p2170_p4 }
  0x54   : > { %v251_v0 = vlaneseq  ;;  %v1783_v1 = vmov 1983009808   ;;  %v1784_v4 = vmov 0.0   ;;  %vm1785_vm0 = vmmov 0   ;;  %v239_v8 = vld [vmem:[%s201_s12] sm:$0x3f] }
  0x55   : > { %1760 = vsyncadd (%p2171_p0), [#allocation6], 4294967232  ;;  %v249_v2 = vunpack.c.l.s4 %v1783_v1  ;;  %1450 = vmatprep.subr.bf16.mxu1 %v1784_v4  ;;  %1452 = vmatprep.mubr.msk.bf16.mxu1 %vm1785_vm0, %v1784_v4  ;;  %v1786_v6 = vmov 0   ;;  %v247_v10 = vcombine.high %v239_v8, %v239_v8  ;;  %v1990_v11 = vld [vmem:[#allocation5] sm:$0xf]  ;;  %s1787_s21 = smov 127  }
  0x56   : > { %v1981_v3 = vshrl.u32 %v251_v0, 7  ;;  %318 = vmatprep.mubr.bf16.mxu0 %v1786_v6  ;;  %v1397_v14 = vcombine.low %v1990_v11, %v1990_v11  ;;  %s1788_s23 = smov 124   ;;  %s1789_s6 = smov 126   ;;  %vm276_vm1 = vcmask 1041408   ;;  %vm269_vm2 = vcmask 1039360  }
  0x57   : > { %v250_v5 = vunpack.c.0.s8 %v249_v2  ;;  %s1790_s30 = smov 120   ;;  %s1791_s8 = smov 110   ;;  %vm272_vm3 = vcmask 31744   ;;  %vm468_vm4 = vcmask 1031168   ;;  %vm575_vm5 = vcmask 900096  }
  0x58   : > { %s1792_s9 = smov 116   ;;  %s1793_s13 = smov 109   ;;  %vm682_vm6 = vcmask 891904   ;;  %vm789_vm7 = vcmask 883712   ;;  %vm896_vm8 = vcmask 752640   ;;  %vm1003_vm9 = vcmask 744448  }
  0x59   : > { %v253_v7 = vsub.s32 %v250_v5, %v1981_v3  ;;  %s1794_s14 = smov 112   ;;  %s1795_s5 = smov 108   ;;  %vm1110_vm10 = vcmask 736256   ;;  %vm1261_vm11 = vcmask 257024   ;;  %vm1230_vm12 = vcmask 261120  }
  0x5a   : > { %s1796_s27 = smov 92   ;;  %s1797_s28 = smov 104  }
  0x5b   : > { %v1988_v9 = vrot.slane %v239_v8, %v253_v7  ;;  %v261_v12 = vrot.slane %v247_v10, %v253_v7  ;;  %s1798_s25 = smov 91   ;;  %s1799_s29 = smov 100  }
  0x5c   : > { %s1800_s10 = smov 90   ;;  %s1801_s11 = smov 96  }
  0x5d   : > { %263 = vrot.lane.b32.xlu0 %v1988_v9, %s1787_s21  ;;  %v1995_v13 = vcombine.high %v1988_v9, %v1988_v9  ;;  %267 = vrot.lane.b32.xlu1 %v261_v12, %s1787_s21  ;;  %v377_v21 = vsel %vm276_vm1, %v261_v12, 0  ;;  %v371_v24 = vsel %vm276_vm1, %v1988_v9, 0 }
  0x61   : > { %265 = vrot.lane.b32.xlu0 %v1995_v13, %s1787_s21  ;;  %244 = vrot.lane.b32.xlu1 %v1397_v14, %s1788_s23  ;;  %s1571_s23 = smul.u32 12, %s1969_s7 }
  0x65   : > { %462 = vrot.lane.b32.xlu0 %v1988_v9, %s1789_s6  ;;  %464 = vrot.lane.b32.xlu1 %v1995_v13, %s1789_s6 }
  0x69   : > { %466 = vrot.lane.b32.xlu0 %v261_v12, %s1789_s6  ;;  %460 = vrot.lane.b32.xlu1 %v1397_v14, %s1790_s30  ;;  %s227_s6 = scalar_lea.vmem [#allocation7], %s1571_s23  ;;  %s1572_s30 = smul.u32 192, %s1849_s19 }
  0x6d   : > { %569 = vrot.lane.b32.xlu0 %v1988_v9, %s1791_s8  ;;  %571 = vrot.lane.b32.xlu1 %v1995_v13, %s1791_s8 }
  0x71   : > { %573 = vrot.lane.b32.xlu0 %v261_v12, %s1791_s8  ;;  %567 = vrot.lane.b32.xlu1 %v1397_v14, %s1792_s9  ;;  %s1282_s8 = sshll.u32 %s227_s6, 4  ;;  %s1283_s8 = int_to_ptr.vmem [resolvable:$true] %s1282_s8 }
  0x75   : > { %676 = vrot.lane.b32.xlu0 %v1988_v9, %s1793_s13  ;;  %678 = vrot.lane.b32.xlu1 %v1995_v13, %s1793_s13 }
  0x79   : > { %680 = vrot.lane.b32.xlu0 %v261_v12, %s1793_s13  ;;  %674 = vrot.lane.b32.xlu1 %v1397_v14, %s1794_s14  ;;  %s2106_s14 = scalar_lea.hbm %s2152_s3, %s1572_s30 }
  0x7d   : > { %783 = vrot.lane.b32.xlu0 %v1988_v9, %s1795_s5  ;;  %785 = vrot.lane.b32.xlu1 %v1995_v13, %s1795_s5 }
  0x81   : > { %787 = vrot.lane.b32.xlu0 %v261_v12, %s1795_s5  ;;  %781 = vrot.lane.b32.xlu1 %v1397_v14, %s1795_s5  ;;  %s1264_s5 = scalar_lea.sflag [#allocation4], %s1969_s7 }
  0x85   : > { %890 = vrot.lane.b32.xlu0 %v1988_v9, %s1796_s27  ;;  %892 = vrot.lane.b32.xlu1 %v1995_v13, %s1796_s27 }
  0x89   : > { %894 = vrot.lane.b32.xlu0 %v261_v12, %s1796_s27  ;;  %888 = vrot.lane.b32.xlu1 %v1397_v14, %s1797_s28  ;;  %s1709_s27 = scalar_lea.vmem %s1283_s8, 192  ;;  %s1802_s28 = smov [#allocation7]  }
  0x8a   : > { %p1710_p6 = scmp.ne.s32.totalorder %s1283_s8, %s1709_s27 }
  0x8c   : > { %p1711_p9 = pnand %p1710_p6, %p1920_p8 }
  0x8d   : > { %997 = vrot.lane.b32.xlu0 %v1988_v9, %s1798_s25  ;;  %999 = vrot.lane.b32.xlu1 %v1995_v13, %s1798_s25 }
  0x8e   : > { %p1712_p12 = pneg %p1711_p9 }
  0x91   : > { %1001 = vrot.lane.b32.xlu0 %v261_v12, %s1798_s25  ;;  %995 = vrot.lane.b32.xlu1 %v1397_v14, %s1799_s29  ;;  %s1713_s25 = sshll.u32 %s1802_s28, 4  ;;  %s1714_s25 = int_to_ptr.vmem [resolvable:$false] %s1713_s25 }
  0x92   : > { %s1715_s29 = scalar_lea.vmem %s1714_s25, 384  ;;  %p1716_p13 = scmp.lt.s32.totalorder %s1283_s8, %s1714_s25 }
  0x93   : > { %p1717_p11 = scmp.lt.s32.totalorder %s1715_s29, %s1709_s27 }
  0x95   : > { %1104 = vrot.lane.b32.xlu0 %v1988_v9, %s1800_s10  ;;  %1106 = vrot.lane.b32.xlu1 %v1995_v13, %s1800_s10  ;;  %p1718_p5 = por %p1717_p11, %p1716_p13 }
  0x97   : > { %p1719_p10 = pnand %p1718_p5, %p1712_p12 }
  0x99   : > { %1108 = vrot.lane.b32.xlu0 %v261_v12, %s1800_s10  ;;  %1102 = vrot.lane.b32.xlu1 %v1397_v14, %s1801_s11 }
  0xcf   : > { %v264_v15 = vpop.permute.xlu0 %263  ;;  %v268_v16 = vpop.permute.xlu1 %267 }
  0xd0   : > { %v284_v17 = vsel %vm276_vm1, %v268_v16, 0 }
  0xd1   : > { %1451 = vmatpush3.bf16.msra.mxu1 %v284_v17 }
  0xd2   : > { %1456 = vmatprep.subr.bf16.mxu1 %v1784_v4 }
  0xd3   : > { %v266_v18 = vpop.permute.xlu0 %265  ;;  %v245_v22 = vpop.permute.xlu1 %244 }
  0xd4   : > { %v271_v19 = vsel %vm269_vm2, %v266_v18, %v268_v16  ;;  %v270_v20 = vsel %vm269_vm2, %v264_v15, %v266_v18  ;;  %1453 = vmatmul.mubr.msk.bf16.vlgmr.msra.gmra.mrb[0].mxu1 %vm272_vm3, %v245_v22 }
  0xd5   : > { %1398 = vmatprep.subr.msk.bf16.mxu0 %vm276_vm1, %v271_v19  ;;  %v278_v23 = vsel %vm276_vm1, %v270_v20, 0  ;;  %1457 = vmatpush3.bf16.msra.mxu1 %v377_v21  ;;  %v1221_v20 = vsub.s32 2, %v1981_v3  ;;  %v1209_v21 = vld [vmem:[%s2151_s2] sm:$0x7] }
  0xd6   : > { %287 = vmatpush1.bf16.msra.mxu0 %v278_v23  ;;  %1458 = vmatprep.mubr.msk.bf16.mxu1 %vm1785_vm0, %v1784_v4 }
  0xd7   : > { %1401 = vmatprep.subr.msk.bf16.mxu0 %vm276_vm1, %v1995_v13  ;;  %v463_v25 = vpop.permute.xlu0 %462  ;;  %1462 = vmatprep.subr.bf16.mxu1 %v1784_v4  ;;  %v465_v26 = vpop.permute.xlu1 %464  ;;  %v1222_v23 = vrot.slane %v1209_v21, %v1221_v20 }
  0xd8   : > { %v469_v31 = vsel %vm468_vm4, %v463_v25, %v465_v26 }
  0xd9   : > { %1399 = vmatmul.mubr.msk.bf16.vlgmr.msra.gmra.mrb[0].mxu0 %vm272_vm3, %v245_v22  ;;  %v475_v34 = vsel %vm276_vm1, %v469_v31, 0  ;;  %v1213_v22 = vsub.s32 0, %v1981_v3 }
  0xda   : > { %380 = vmatpush1.bf16.msra.mxu0 %v371_v24  ;;  %411 = vmatprep.mubr.bf16.mxu0 %v1786_v6 }
  0xdb   : > { %v467_v27 = vpop.permute.xlu0 %466  ;;  %v461_v29 = vpop.permute.xlu1 %460  ;;  %v1214_v25 = vrot.slane %v1209_v21, %v1213_v22 }
  0xdc   : > { %v470_v28 = vsel %vm468_vm4, %v465_v26, %v467_v27  ;;  %v481_v32 = vsel %vm276_vm1, %v467_v27, 0 }
  0xdd   : > { %1404 = vmatprep.subr.msk.bf16.mxu0 %vm276_vm1, %v470_v28 }
  0xdf   : > { %v570_v30 = vpop.permute.xlu0 %569  ;;  %v572_v33 = vpop.permute.xlu1 %571 }
  0xe0   : > { %1459 = vmatmul.mubr.msk.bf16.vlgmr.msra.gmra.mrb[0].mxu1 %vm272_vm3, %v1990_v11  ;;  %v576_v39 = vsel %vm575_vm5, %v570_v30, %v572_v33 }
  0xe1   : > { %1463 = vmatpush3.bf16.msra.mxu1 %v481_v32  ;;  %1464 = vmatprep.mubr.msk.bf16.mxu1 %vm1785_vm0, %v1784_v4  ;;  %v582_v43 = vsel %vm276_vm1, %v576_v39, 0 }
  0xe2   : > { %1468 = vmatprep.subr.bf16.mxu1 %v1784_v4 }
  0xe3   : > { %v574_v35 = vpop.permute.xlu0 %573  ;;  %v568_v38 = vpop.permute.xlu1 %567 }
  0xe4   : > { %v577_v36 = vsel %vm575_vm5, %v572_v33, %v574_v35  ;;  %v588_v40 = vsel %vm276_vm1, %v574_v35, 0 }
  0xe5   : > { %1402 = vmatmul.mubr.msk.bf16.vlgmr.msra.gmra.mrb[0].mxu0 %vm272_vm3, %v1990_v11 }
  0xe6   : > { %484 = vmatpush1.bf16.msra.mxu0 %v475_v34  ;;  %515 = vmatprep.mubr.bf16.mxu0 %v1786_v6 }
  0xe7   : > { %1407 = vmatprep.subr.msk.bf16.mxu0 %vm276_vm1, %v577_v36  ;;  %v677_v37 = vpop.permute.xlu0 %676  ;;  %v679_v41 = vpop.permute.xlu1 %678 }
  0xe8   : > { %v683_v47 = vsel %vm682_vm6, %v677_v37, %v679_v41 }
  0xe9   : > { %v689_v51 = vsel %vm276_vm1, %v683_v47, 0 }
  0xeb   : > { %v681_v42 = vpop.permute.xlu0 %680  ;;  %v675_v46 = vpop.permute.xlu1 %674 }
  0xec   : > { %1465 = vmatmul.mubr.msk.bf16.vlgmr.msra.gmra.mrb[0].mxu1 %vm272_vm3, %v461_v29  ;;  %v684_v44 = vsel %vm682_vm6, %v679_v41, %v681_v42  ;;  %v695_v48 = vsel %vm276_vm1, %v681_v42, 0 }
  0xed   : > { %1469 = vmatpush3.bf16.msra.mxu1 %v588_v40  ;;  %1470 = vmatprep.mubr.msk.bf16.mxu1 %vm1785_vm0, %v1784_v4 }
  0xee   : > { %1474 = vmatprep.subr.bf16.mxu1 %v1784_v4 }
  0xef   : > { %v784_v45 = vpop.permute.xlu0 %783  ;;  %v786_v49 = vpop.permute.xlu1 %785 }
  0xf0   : > { %v790_v55 = vsel %vm789_vm7, %v784_v45, %v786_v49 }
  0xf1   : > { %1405 = vmatmul.mubr.msk.bf16.vlgmr.msra.gmra.mrb[0].mxu0 %vm272_vm3, %v461_v29  ;;  %v796_v59 = vsel %vm276_vm1, %v790_v55, 0 }
  0xf2   : > { %591 = vmatpush1.bf16.msra.mxu0 %v582_v43  ;;  %622 = vmatprep.mubr.bf16.mxu0 %v1786_v6 }
  0xf3   : > { %1410 = vmatprep.subr.msk.bf16.mxu0 %vm276_vm1, %v684_v44  ;;  %v788_v50 = vpop.permute.xlu0 %787  ;;  %v782_v54 = vpop.permute.xlu1 %781 }
  0xf4   : > { %v791_v52 = vsel %vm789_vm7, %v786_v49, %v788_v50  ;;  %v802_v56 = vsel %vm276_vm1, %v788_v50, 0 }
  0xf7   : > { %v891_v53 = vpop.permute.xlu0 %890  ;;  %v893_v57 = vpop.permute.xlu1 %892 }
  0xf8   : > { %1471 = vmatmul.mubr.msk.bf16.vlgmr.msra.gmra.mrb[0].mxu1 %vm272_vm3, %v568_v38  ;;  %v897_v63 = vsel %vm896_vm8, %v891_v53, %v893_v57 }
  0xf9   : > { %1475 = vmatpush3.bf16.msra.mxu1 %v695_v48  ;;  %1476 = vmatprep.mubr.msk.bf16.mxu1 %vm1785_vm0, %v1784_v4  ;;  %v903_v5 = vsel %vm276_vm1, %v897_v63, 0 }
  0xfa   : > { %1480 = vmatprep.subr.bf16.mxu1 %v1784_v4 }
  0xfb   : > { %v895_v58 = vpop.permute.xlu0 %894  ;;  %v889_v62 = vpop.permute.xlu1 %888 }
  0xfc   : > { %v898_v60 = vsel %vm896_vm8, %v893_v57, %v895_v58  ;;  %v909_v0 = vsel %vm276_vm1, %v895_v58, 0 }
  0xfd   : > { %1408 = vmatmul.mubr.msk.bf16.vlgmr.msra.gmra.mrb[0].mxu0 %vm272_vm3, %v568_v38 }
  0xfe   : > { %698 = vmatpush1.bf16.msra.mxu0 %v689_v51  ;;  %729 = vmatprep.mubr.bf16.mxu0 %v1786_v6 }
  0xff   : > { %1413 = vmatprep.subr.msk.bf16.mxu0 %vm276_vm1, %v791_v52  ;;  %v998_v61 = vpop.permute.xlu0 %997  ;;  %v1000_v1 = vpop.permute.xlu1 %999 }
 0x100   : > { %v1004_v10 = vsel %vm1003_vm9, %v998_v61, %v1000_v1 }
 0x101   : > { %v1010_v14 = vsel %vm276_vm1, %v1004_v10, 0 }
 0x103   : > { %v1002_v2 = vpop.permute.xlu0 %1001  ;;  %v996_v9 = vpop.permute.xlu1 %995 }
 0x104   : > { %1477 = vmatmul.mubr.msk.bf16.vlgmr.msra.gmra.mrb[0].mxu1 %vm272_vm3, %v675_v46  ;;  %v1005_v7 = vsel %vm1003_vm9, %v1000_v1, %v1002_v2  ;;  %v1016_v11 = vsel %vm276_vm1, %v1002_v2, 0 }
 0x105   : > { %1481 = vmatpush3.bf16.msra.mxu1 %v802_v56  ;;  %1482 = vmatprep.mubr.msk.bf16.mxu1 %vm1785_vm0, %v1784_v4 }
 0x106   : > { %1486 = vmatprep.subr.bf16.mxu1 %v1784_v4 }
 0x107   : > { %v1105_v8 = vpop.permute.xlu0 %1104  ;;  %v1107_v12 = vpop.permute.xlu1 %1106 }
 0x108   : > { %v1111_v16 = vsel %vm1110_vm10, %v1105_v8, %v1107_v12 }
 0x109   : > { %1411 = vmatmul.mubr.msk.bf16.vlgmr.msra.gmra.mrb[0].mxu0 %vm272_vm3, %v675_v46  ;;  %v1117_v18 = vsel %vm276_vm1, %v1111_v16, 0 }
 0x10a   : > { %805 = vmatpush1.bf16.msra.mxu0 %v796_v59  ;;  %836 = vmatprep.mubr.bf16.mxu0 %v1786_v6 }
 0x10b   : > { %1416 = vmatprep.subr.msk.bf16.mxu0 %vm276_vm1, %v898_v60  ;;  %v1109_v13 = vpop.permute.xlu0 %1108  ;;  %v1103_v19 = vpop.permute.xlu1 %1102 }
 0x10c   : > { %v1112_v15 = vsel %vm1110_vm10, %v1107_v12, %v1109_v13  ;;  %v1123_v17 = vsel %vm276_vm1, %v1109_v13, 0 }
 0x110   : > { %1483 = vmatmul.mubr.msk.bf16.vlgmr.msra.gmra.mrb[0].mxu1 %vm272_vm3, %v782_v54 }
 0x111   : > { %1487 = vmatpush3.bf16.msra.mxu1 %v909_v0  ;;  %1488 = vmatprep.mubr.msk.bf16.mxu1 %vm1785_vm0, %v1784_v4 }
 0x112   : > { %1492 = vmatprep.subr.bf16.mxu1 %v1784_v4 }
 0x115   : > { %1414 = vmatmul.mubr.msk.bf16.vlgmr.msra.gmra.mrb[0].mxu0 %vm272_vm3, %v782_v54 }
 0x116   : > { %912 = vmatpush1.bf16.msra.mxu0 %v903_v5  ;;  %943 = vmatprep.mubr.bf16.mxu0 %v1786_v6 }
 0x117   : > { %1419 = vmatprep.subr.msk.bf16.mxu0 %vm276_vm1, %v1005_v7 }
 0x11c   : > { %1489 = vmatmul.mubr.msk.bf16.vlgmr.msra.gmra.mrb[0].mxu1 %vm272_vm3, %v889_v62 }
 0x11d   : > { %1493 = vmatpush3.bf16.msra.mxu1 %v1016_v11  ;;  %1494 = vmatprep.mubr.msk.bf16.mxu1 %vm1785_vm0, %v1784_v4 }
 0x11e   : > { %1498 = vmatprep.subr.bf16.mxu1 %v1784_v4 }
 0x121   : > { %1417 = vmatmul.mubr.msk.bf16.vlgmr.msra.gmra.mrb[0].mxu0 %vm272_vm3, %v889_v62 }
 0x122   : > { %1019 = vmatpush1.bf16.msra.mxu0 %v1010_v14  ;;  %1050 = vmatprep.mubr.bf16.mxu0 %v1786_v6 }
 0x123   : > { %1422 = vmatprep.subr.msk.bf16.mxu0 %vm276_vm1, %v1112_v15 }
 0x128   : > { %1495 = vmatmul.mubr.msk.bf16.vlgmr.msra.gmra.mrb[0].mxu1 %vm272_vm3, %v996_v9 }
 0x129   : > { %1499 = vmatpush3.bf16.msra.mxu1 %v1123_v17  ;;  %1500 = vmatprep.mubr.msk.bf16.mxu1 %vm1785_vm0, %v1784_v4  ;;  %v1217_v4 = vsub.s32 1, %v1981_v3 }
 0x12b   : > { %v1218_v27 = vrot.slane %v1209_v21, %v1217_v4 }
 0x12d   : > { %1420 = vmatmul.mubr.msk.bf16.vlgmr.msra.gmra.mrb[0].mxu0 %vm272_vm3, %v996_v9 }
 0x12e   : > { %1126 = vmatpush1.bf16.msra.mxu0 %v1117_v18  ;;  %1157 = vmatprep.mubr.bf16.mxu0 %v1786_v6 }
 0x134   : > { %1501 = vmatmul.mubr.msk.bf16.vlgmr.msra.gmra.mrb[0].mxu1 %vm272_vm3, %v1103_v19 }
 0x139   : > { %1423 = vmatmul.mubr.msk.bf16.vlgmr.msra.gmra.mrb[0].mxu0 %vm272_vm3, %v1103_v19 }
 0x207   : > { %v1200_v24 = vpop.f32.mrb[0].mxu1 }
 0x208   : > { %v1431_v6 = vpack.c.bf16 %v1200_v24, %v1200_v24  ;;  %v1502_v26 = vpop.f32.mrb[1].mxu1  ;;  %v1228_v28 = vmul.f32 %v1222_v23, %v1200_v24 }
 0x209   : > { %v1203_v29 = vpop.f32.mrb[2].mxu1 }
 0x20a   : > { %v1503_v31 = vpop.f32.mrb[3].mxu1  ;;  %1262 = vst.msk [vmem:[%s227_s6 + $0x8] sm:$0xf] %vm1261_vm11, %v1431_v6  ;;  %v1239_v3 = vmul.f32 %v1228_v28, %v1228_v28  ;;  %v1231_v41 = vsel %vm1230_vm12, %v1228_v28, 0.0 }
 0x20c   : > { %v1159_v30 = vpop.f32.mrb[0].mxu0  ;;  %v1241_v44 = vsel %vm1230_vm12, %v1239_v3, 0.0 }
 0x20d   : > { %v1226_v32 = vmul.f32 %v1214_v25, %v1159_v30  ;;  %v1161_v33 = vpop.f32.mrb[1].mxu0 }
 0x20e   : > { %v1227_v34 = vmul.f32 %v1218_v27, %v1161_v33  ;;  %v1430_v35 = vpack.c.bf16 %v1161_v33, %v1159_v30  ;;  %v1163_v36 = vpop.f32.mrb[2].mxu0 }
 0x20f   : > { %v1237_v37 = vmul.f32 %v1226_v32, %v1226_v32  ;;  %v1164_v38 = vpop.f32.mrb[3].mxu0 }
 0x210   : > { %v1238_v39 = vmul.f32 %v1227_v34, %v1227_v34  ;;  %1260 = vst [vmem:[%s227_s6] sm:$0xff] %v1430_v35  ;;  %v1229_v40 = vadd.f32 %v1227_v34, %v1226_v32 }
 0x212   : > { %v1232_v42 = vadd.f32 %v1231_v41, %v1229_v40  ;;  %v1240_v43 = vadd.f32 %v1238_v39, %v1237_v37 }
 0x214   : > { %1233 = vadd.xlane.f32.xlu0 %v1232_v42  ;;  %v1242_v45 = vadd.f32 %v1241_v44, %v1240_v43 }
 0x216   : > { %1243 = vadd.xlane.f32.xlu1 %v1242_v45 }
 0x217   : > { %1722 = shalt.err (!%p1719_p10)
}
 0x218   : > { %s1723_s7 = scalar_lea.hbm %s2106_s14, 192  ;;  %s1727_s12 = scalar_lea.hbm %s2152_s3, 384 }
 0x219   : > { %p1724_p1 = scmp.ne.s32.totalorder %s2106_s14, %s1723_s7  ;;  %p1728_p3 = scmp.lt.u32.totalorder %s2106_s14, %s2152_s3 }
 0x21a   : > { %p1729_p4 = scmp.lt.u32.totalorder %s1727_s12, %s1723_s7  ;;  %p1731_p6 = scmp.lt.u32.totalorder %s1723_s7, %s2106_s14 }
 0x21b   : > { %p1725_p2 = pnand %p1724_p1, %p1920_p8 }
 0x21c   : > { %p1730_p0 = por %p1729_p4, %p1728_p3 }
 0x21d   : > { %p1726_p7 = pneg %p1725_p2 }
 0x21e   : > { %p1732_p9 = por %p1731_p6, %p1730_p0 }
 0x220   : > { %p1733_p12 = pnand %p1732_p9, %p1726_p7 }
 0x222   : > { %1736 = shalt.err (!%p1733_p12)
}
 0x223   : > { %1579 = dma.vmem_to_hbm [thread:$0]  (%p1920_p8), %s1283_s8, 192, %s2106_s14, %s1264_s5   ;;  %vm1235_vm13 = vcmask 7168   ;;  %vm1245_vm14 = vcmask 15368  }
 0x224   : > { %p234_p13 = scmp.lt.s32.totalorder %s1849_s19, 1 }
 0x226   : > { %s2179_s19 = smov (!%p234_p13, %s1849_s19), 1 }
 0x227   : > { %s1396_s6 = sshll.u32 %s2179_s19, 3 }
 0x228   : > { %s237_s13 = scalar_lea.vmem %s2153_s4, %s1396_s6 }
 0x2a1   : > { %v1234_v46 = vpop.xlane.xlu0 %1233 }
 0x2a2   : > { %1236 = vst.msk [vmem:[%s237_s13] sm:$0xff] %vm1235_vm13, %v1234_v46 }
 0x2a3   : > { %v1244_v47 = vpop.xlane.xlu1 %1243 }
 0x2a4   : > { %1246 = vst.msk [vmem:[%s237_s13] sm:$0xff] %vm1245_vm14, %v1244_v47 }
 0x2a5 PF: > { %s1297_s24 = sand.u32 1, %s1767_s15   ;;  %p2172_p11 = scmp.ne.s32.totalorder %s2158_s22, 0 }
 0x2a6   : > { %p2173_p8 = scmp.ge.s32.totalorder %s1779_s18, 2  ;;  %s1298_s8 = scalar_lea.sflag [#allocation4], %s1297_s24 }
 0x2a8   : > { %p1590_p5 = pnand %p2173_p8, %p2172_p11 }
 0x2aa   : > { %1762 = dma.done.wait (!%p1590_p5), %s1298_s8, 192  }
 0x2ab   : > { %1764 = vsyncadd (!%p1590_p5), %s1298_s8, 4294967104  ;;  %p19_p10 = scmp.ge.s32.totalorder %s1876_s26, 4   ;;  %s2174_s15 = smov %s1771_s16 }
 0x2ac   : > { %s2175_s16 = smov %s1775_s17  ;;  %s2176_s17 = smov %s1912_s20 }
 0x2ad   : > { %s2177_s18 = smov %s1876_s26  ;;  %21 = sbr.rel (!%p19_p10) target bundleno = 6 (0x6), region = 93 }
 0x2b4   :  { %1310 = vsyncpa [#allocation3], 1 }
 0x2b5   :  { %1312 = vsyncpa [#allocation3 + $0x1], 1 }
 0x2b6   :  { %1313 = vsyncpa [#allocation6], 1 }
 0x2b7   :  { %1314 = vsyncpa [#allocation4], 1 }
 0x2b8   :  { %1316 = vsyncpa [#allocation4 + $0x1], 1 }

</bundles_post_ra>
